<compile_context>
chip_gen: v7x
topology: tpu7x:2x2x1
jax: 0.10.0
libtpu: 0.0.40
codegen_flags: <defaults>
</compile_context>

<pallas_src>
import functools
import math

import jax
import jax.numpy as jnp
from jax.experimental import pallas as pl
from jax.experimental.pallas import tpu as pltpu


# --------------------------------------------------------------------------
# Pallas kernel: full VAnet forward for one batch tile.
# Heads are fused: wav = [wa | wv]  ->  av = h2 @ wav + bav, then slice.
# --------------------------------------------------------------------------
def vanet_kernel(action_dim, s_ref, w1_ref, b1_ref, w2_ref, b2_ref,
                 wav_ref, bav_ref, q_ref):
    s = s_ref[...]

    # fc1 + ReLU
    h1 = jnp.dot(s, w1_ref[...], preferred_element_type=jnp.float32) + b1_ref[...]
    h1 = jnp.maximum(h1, 0.0)

    # fc2 + ReLU
    h2 = jnp.dot(h1, w2_ref[...], preferred_element_type=jnp.float32) + b2_ref[...]
    h2 = jnp.maximum(h2, 0.0)

    # fused advantage+value heads: single MXU pass over (H, A+1)
    av = jnp.dot(h2, wav_ref[...], preferred_element_type=jnp.float32) + bav_ref[...]
    a = av[:, :action_dim]
    v = av[:, action_dim:action_dim + 1]

    # dueling combine: q = v + (a - mean(a, axis=-1, keepdims=True))
    q_ref[...] = v + (a - jnp.mean(a, axis=-1, keepdims=True))


# --------------------------------------------------------------------------
# Wrapper.
#   * small B  : gridless call, everything VMEM-resident, no pipeline overhead.
#   * large B  : batch tiled over a "parallel" grid axis (v7x megacore),
#                weights resident via constant index_map.
# --------------------------------------------------------------------------
def vanet_forward(s, params, *, batch_tile=256):
    (w1, b1, w2, b2, wa, ba, wv, bv) = params
    B, state_dim = s.shape
    hidden_dim = w1.shape[1]
    action_dim = wa.shape[1]

    # Fuse advantage + value heads into one weight / bias.
    wav = jnp.concatenate([wa, wv], axis=1)          # (H, A+1)
    bav = jnp.concatenate([ba, bv], axis=1)          # (1, A+1)

    kernel = functools.partial(vanet_kernel, action_dim)
    args = (s, w1, b1, w2, b2, wav, bav)

    flops = 2 * B * (state_dim * hidden_dim
                     + hidden_dim * hidden_dim
                     + hidden_dim * (action_dim + 1))
    bytes_accessed = sum(int(a.size) * a.dtype.itemsize for a in args) \
        + B * action_dim * 4
    cost = pl.CostEstimate(flops=flops, transcendentals=0,
                           bytes_accessed=bytes_accessed)
    out_shape = jax.ShapeDtypeStruct((B, action_dim), jnp.float32)

    if B <= batch_tile or B % batch_tile != 0:
        # Gridless path: one kernel invocation, all arrays fully VMEM-resident.
        vmem = pltpu.MemorySpace.VMEM
        return pl.pallas_call(
            kernel,
            out_shape=out_shape,
            in_specs=[pl.BlockSpec(memory_space=vmem) for _ in args],
            out_specs=pl.BlockSpec(memory_space=vmem),
            cost_estimate=cost,
        )(*args)

    # Batch-tiled path (large B): weights stay resident across batch tiles.
    nb = B // batch_tile
    const2 = lambda i: (0, 0)
    return pl.pallas_call(
        kernel,
        out_shape=out_shape,
        grid=(nb,),
        in_specs=[
            pl.BlockSpec((batch_tile, state_dim), lambda i: (i, 0)),
            pl.BlockSpec(w1.shape, const2),
            pl.BlockSpec(b1.shape, const2),
            pl.BlockSpec(w2.shape, const2),
            pl.BlockSpec(b2.shape, const2),
            pl.BlockSpec(wav.shape, const2),
            pl.BlockSpec(bav.shape, const2),
        ],
        out_specs=pl.BlockSpec((batch_tile, action_dim), lambda i: (i, 0)),
        compiler_params=pltpu.CompilerParams(
            dimension_semantics=("parallel",)),
        cost_estimate=cost,
    )(*args)


# --------------------------------------------------------------------------
# Deterministic parameter construction matching the PyTorch __init__.
# --------------------------------------------------------------------------
def _uniform(key, shape, bound):
    return jax.random.uniform(key, shape, jnp.float32, -bound, bound)


def _scale_noise(key, size):
    x = jax.random.normal(key, (size,), jnp.float32)
    return jnp.sign(x) * jnp.sqrt(jnp.abs(x))


def make_noisy_linear(key, in_f, out_f, sigma_init=0.5):
    """Returns effective (W^T, b) with W = mu + sigma * eps (factorised noise)."""
    k_wmu, k_bmu, k_ei, k_ej = jax.random.split(key, 4)
    mu_range = 1.0 / math.sqrt(in_f)
    weight_mu = _uniform(k_wmu, (out_f, in_f), mu_range)
    bias_mu = _uniform(k_bmu, (out_f,), mu_range)
    weight_sigma = jnp.full((out_f, in_f), sigma_init / math.sqrt(in_f), jnp.float32)
    bias_sigma = jnp.full((out_f,), sigma_init / math.sqrt(out_f), jnp.float32)
    eps_i = _scale_noise(k_ei, in_f)
    eps_j = _scale_noise(k_ej, out_f)
    weight_eps = jnp.outer(eps_j, eps_i)
    bias_eps = eps_j
    w_eff = weight_mu + weight_sigma * weight_eps          # (out, in)
    b_eff = bias_mu + bias_sigma * bias_eps                # (out,)
    return w_eff.T, b_eff.reshape(1, out_f)                # kernel layout


def make_linear(key, in_f, out_f):
    k_w, k_b = jax.random.split(key)
    bound = 1.0 / math.sqrt(in_f)
    w = _uniform(k_w, (out_f, in_f), bound)                # PyTorch layout (out, in)
    b = _uniform(k_b, (out_f,), bound)
    return w.T, b.reshape(1, out_f)                        # kernel layout


def make_params(key, state_dim, hidden_dim, action_dim):
    k1, k2, ka, kv = jax.random.split(key, 4)
    w1, b1 = make_linear(k1, state_dim, hidden_dim)
    w2, b2 = make_linear(k2, hidden_dim, hidden_dim)
    wa, ba = make_noisy_linear(ka, hidden_dim, action_dim)
    wv, bv = make_noisy_linear(kv, hidden_dim, 1)
    return (w1, b1, w2, b2, wa, ba, wv, bv)


# --------------------------------------------------------------------------
# Pure-JAX reference for a sanity check.
# --------------------------------------------------------------------------
def vanet_ref(s, params):
    (w1, b1, w2, b2, wa, ba, wv, bv) = params
    h1 = jnp.maximum(s @ w1 + b1, 0.0)
    h2 = jnp.maximum(h1 @ w2 + b2, 0.0)
    a = h2 @ wa + ba
    v = h2 @ wv + bv
    return v + (a - jnp.mean(a, axis=-1, keepdims=True))


if __name__ == "__main__":
    # CartPole-like config: state_dim=4, hidden_dim=32, action_dim=2
    STATE_DIM, HIDDEN_DIM, ACTION_DIM = 4, 32, 2

    key = jax.random.PRNGKey(0)
    k_params, k_in1, k_in2 = jax.random.split(key, 3)
    params = make_params(k_params, STATE_DIM, HIDDEN_DIM, ACTION_DIM)

    # 1) gridless path (small/medium batch, fully VMEM-resident, no pipeline)
    B1 = 128
    s1 = jax.random.normal(k_in1, (B1, STATE_DIM), jnp.float32)
    q1 = jax.block_until_ready(vanet_forward(s1, params))
    assert q1.shape == (B1, ACTION_DIM)
    assert jnp.allclose(q1, vanet_ref(s1, params), atol=1e-5, rtol=1e-5), \
        "gridless path mismatch vs JAX reference"

    # 2) batch-tiled path (large batch, parallel grid axis for v7x megacore)
    B2 = 512
    s2 = jax.random.normal(k_in2, (B2, STATE_DIM), jnp.float32)
    q2 = jax.block_until_ready(vanet_forward(s2, params, batch_tile=128))
    assert q2.shape == (B2, ACTION_DIM)
    assert jnp.allclose(q2, vanet_ref(s2, params), atol=1e-5, rtol=1e-5), \
        "tiled path mismatch vs JAX reference"

    print("KERNEL_OK")
</pallas_src>

<mosaic_0001>
module attributes {stable_mosaic.version = 11 : i64} {
  func.func @vanet_kernel(%arg0: memref<128x4xf32, #tpu.memory_space<vmem>>, %arg1: memref<4x32xf32, #tpu.memory_space<vmem>>, %arg2: memref<1x32xf32, #tpu.memory_space<vmem>>, %arg3: memref<32x32xf32, #tpu.memory_space<vmem>>, %arg4: memref<1x32xf32, #tpu.memory_space<vmem>>, %arg5: memref<32x3xf32, #tpu.memory_space<vmem>>, %arg6: memref<1x3xf32, #tpu.memory_space<vmem>>, %arg7: memref<128x2xf32, #tpu.memory_space<vmem>>) attributes {dimension_semantics = [], scalar_prefetch = 0 : i64, scratch_operands = 0 : i64, tpu.core_type = #tpu.core_type<tc>} {
    %c0 = arith.constant 0 : index
    %c0_0 = arith.constant 0 : index
    %0 = vector.load %arg0[%c0, %c0_0] : memref<128x4xf32, #tpu.memory_space<vmem>>, vector<128x4xf32>
    %c0_1 = arith.constant 0 : index
    %c0_2 = arith.constant 0 : index
    %1 = vector.load %arg1[%c0_1, %c0_2] : memref<4x32xf32, #tpu.memory_space<vmem>>, vector<4x32xf32>
    %cst = arith.constant dense<0.000000e+00> : vector<128x32xf32>
    %2 = tpu.matmul %0, %1, %cst {dimension_numbers = #tpu.dot_dimension_numbers<[1], [0], [0], [1], [0, 0, 1, 1], [], []>} : vector<128x4xf32>, vector<4x32xf32>, vector<128x32xf32> -> vector<128x32xf32>
    %c0_3 = arith.constant 0 : index
    %c0_4 = arith.constant 0 : index
    %3 = vector.load %arg2[%c0_3, %c0_4] : memref<1x32xf32, #tpu.memory_space<vmem>>, vector<1x32xf32>
    %4 = vector.broadcast %3 : vector<1x32xf32> to vector<128x32xf32>
    %5 = arith.addf %2, %4 : vector<128x32xf32>
    %cst_5 = arith.constant 0.000000e+00 : f32
    %6 = vector.broadcast %cst_5 : f32 to vector<128x32xf32>
    %7 = arith.maximumf %5, %6 : vector<128x32xf32>
    %c0_6 = arith.constant 0 : index
    %c0_7 = arith.constant 0 : index
    %8 = vector.load %arg3[%c0_6, %c0_7] : memref<32x32xf32, #tpu.memory_space<vmem>>, vector<32x32xf32>
    %cst_8 = arith.constant dense<0.000000e+00> : vector<128x32xf32>
    %9 = tpu.matmul %7, %8, %cst_8 {dimension_numbers = #tpu.dot_dimension_numbers<[1], [0], [0], [1], [0, 0, 1, 1], [], []>} : vector<128x32xf32>, vector<32x32xf32>, vector<128x32xf32> -> vector<128x32xf32>
    %c0_9 = arith.constant 0 : index
    %c0_10 = arith.constant 0 : index
    %10 = vector.load %arg4[%c0_9, %c0_10] : memref<1x32xf32, #tpu.memory_space<vmem>>, vector<1x32xf32>
    %11 = vector.broadcast %10 : vector<1x32xf32> to vector<128x32xf32>
    %12 = arith.addf %9, %11 : vector<128x32xf32>
    %cst_11 = arith.constant 0.000000e+00 : f32
    %13 = vector.broadcast %cst_11 : f32 to vector<128x32xf32>
    %14 = arith.maximumf %12, %13 : vector<128x32xf32>
    %c0_12 = arith.constant 0 : index
    %c0_13 = arith.constant 0 : index
    %15 = vector.load %arg5[%c0_12, %c0_13] : memref<32x3xf32, #tpu.memory_space<vmem>>, vector<32x3xf32>
    %cst_14 = arith.constant dense<0.000000e+00> : vector<128x3xf32>
    %16 = tpu.matmul %14, %15, %cst_14 {dimension_numbers = #tpu.dot_dimension_numbers<[1], [0], [0], [1], [0, 0, 1, 1], [], []>} : vector<128x32xf32>, vector<32x3xf32>, vector<128x3xf32> -> vector<128x3xf32>
    %c0_15 = arith.constant 0 : index
    %c0_16 = arith.constant 0 : index
    %17 = vector.load %arg6[%c0_15, %c0_16] : memref<1x3xf32, #tpu.memory_space<vmem>>, vector<1x3xf32>
    %18 = vector.broadcast %17 : vector<1x3xf32> to vector<128x3xf32>
    %19 = arith.addf %16, %18 : vector<128x3xf32>
    %20 = vector.extract_strided_slice %19 {offsets = [0, 0], sizes = [128, 2], strides = [1, 1]} : vector<128x3xf32> to vector<128x2xf32>
    %21 = vector.extract_strided_slice %19 {offsets = [0, 2], sizes = [128, 1], strides = [1, 1]} : vector<128x3xf32> to vector<128x1xf32>
    %cst_17 = arith.constant dense<0.000000e+00> : vector<128xf32>
    %22 = vector.multi_reduction <add>, %20, %cst_17 [1] : vector<128x2xf32> to vector<128xf32>
    %23 = vector.shape_cast %22 : vector<128xf32> to vector<128x1xf32>
    %cst_18 = arith.constant 2.000000e+00 : f32
    %24 = vector.broadcast %cst_18 : f32 to vector<128x1xf32>
    %25 = arith.divf %23, %24 : vector<128x1xf32>
    %26 = vector.broadcast %25 : vector<128x1xf32> to vector<128x2xf32>
    %27 = arith.subf %20, %26 : vector<128x2xf32>
    %28 = vector.broadcast %21 : vector<128x1xf32> to vector<128x2xf32>
    %29 = arith.addf %28, %27 : vector<128x2xf32>
    %c0_19 = arith.constant 0 : index
    %c0_20 = arith.constant 0 : index
    %30 = vector.load %arg7[%c0_19, %c0_20] : memref<128x2xf32, #tpu.memory_space<vmem>>, vector<128x2xf32>
    tpu.vector_store %arg7[%c0_19, %c0_20], %29 {strides = array<i32>} : memref<128x2xf32, #tpu.memory_space<vmem>>, vector<128x2xf32>,
    return
  }
}

</mosaic_0001>

<bundles_post_ra>
// kernel: tpu_custom_call.1
= control target key start
LH: loop header
LB: loop body
LE: loop exit
PB: predicated region body
PF: predicated region fallthrough
CT: control target
= control target key end

     0   :  { %vm99_vm0 = vcmask 1043456   ;;  %vm50_vm1 = vcmask 31744   ;;  %vm275_vm2 = vcmask 261120   ;;  %vm689_vm3 = vcmask 15360   ;;  %s1438_s1 = inlined_call_operand.vmem [shape: f32[4,32], index: 1, kind: input, shape index: {}]   ;;  %s1439_s0 = inlined_call_operand.vmem [shape: f32[128,4], index: 0, kind: input, shape index: {}]   ;;  %s1440_s3 = inlined_call_operand.vmem [shape: f32[32,32], index: 3, kind: input, shape index: {}]   ;;  %s1441_s5 = inlined_call_operand.vmem [shape: f32[32,3], index: 5, kind: input, shape index: {}]   ;;  %s1442_s2 = inlined_call_operand.vmem [shape: f32[1,32], index: 2, kind: input, shape index: {}]   ;;  %s1443_s4 = inlined_call_operand.vmem [shape: f32[1,32], index: 4, kind: input, shape index: {}]   ;;  %s1444_s6 = inlined_call_operand.vmem [shape: f32[1,3], index: 6, kind: input, shape index: {}]   ;;  %s1445_s7 = inlined_call_operand.vmem [shape: f32[128,2], index: 7, kind: output, shape index: {}]  }
   0x1   :  { %v42_v0 = vld [vmem:[%s1438_s1] sm:$0xf]  ;;  %v27_v2 = vld [vmem:[%s1439_s0 + $0x8] sm:$0xff]  ;;  %v28_v3 = vld [vmem:[%s1439_s0 + $0x10] sm:$0xff] }
   0x2   :  { %v26_v1 = vld [vmem:[%s1439_s0] sm:$0xff]  ;;  %996 = vmatprep.subr.msk.mxu0 %vm99_vm0, %v42_v0  ;;  %1102 = vmatprep.subr.msk.mxu1 %vm99_vm0, %v42_v0  ;;  %v35_v5 = vld [vmem:[%s1439_s0 + $0x48] sm:$0xff]  ;;  %v36_v6 = vld [vmem:[%s1439_s0 + $0x50] sm:$0xff] }
   0x3   :  { %998 = vmatprep.mubr.msk.f32.mxu0 %vm50_vm1, %v26_v1  ;;  %997 = vmatpush3.msk.msra.mxu0 %vm99_vm0, %v42_v0  ;;  %v34_v4 = vld [vmem:[%s1439_s0 + $0x40] sm:$0xff]  ;;  %v29_v7 = vld [vmem:[%s1439_s0 + $0x18] sm:$0xff]  ;;  %v265_v10 = vld [vmem:[%s1440_s3 + $0x8] sm:$0xff] }
   0x4   :  { %999 = vmatmul.mubr.msk.f32.vlgmr.msra.gmra.mrb[0].mxu0 %vm50_vm1, %v27_v2  ;;  %1103 = vmatpush3.msk.msra.mxu1 %vm99_vm0, %v42_v0  ;;  %v30_v8 = vld [vmem:[%s1439_s0 + $0x20] sm:$0xff]  ;;  %v37_v11 = vld [vmem:[%s1439_s0 + $0x58] sm:$0xff]  ;;  %v266_v13 = vld [vmem:[%s1440_s3 + $0x10] sm:$0xff] }
   0x5   :  { %1001 = vmatprep.mubr.msk.f32.mxu0 %vm50_vm1, %v28_v3  ;;  %1010 = vmatprep.mubr.msk.f32.mxu1 %vm50_vm1, %v34_v4  ;;  %v264_v9 = vld [vmem:[%s1440_s3] sm:$0xff]  ;;  %v267_v14 = vld [vmem:[%s1440_s3 + $0x18] sm:$0xff]  ;;  %v31_v17 = vld [vmem:[%s1439_s0 + $0x28] sm:$0xff] }
   0x6   :  { %1011 = vmatmul.mubr.msk.f32.vlgmr.msra.gmra.mrb[0].mxu1 %vm50_vm1, %v35_v5  ;;  %v1086_v12 = vpack.c.bf16 %v265_v10, %v264_v9  ;;  %v38_v15 = vld [vmem:[%s1439_s0 + $0x60] sm:$0xff]  ;;  %v1090_v16 = vpack.c.bf16 %v267_v14, %v266_v13  ;;  %v32_v18 = vld [vmem:[%s1439_s0 + $0x30] sm:$0xff]  ;;  %v39_v19 = vld [vmem:[%s1439_s0 + $0x68] sm:$0xff] }
   0x7   :  { %1013 = vmatprep.mubr.msk.f32.mxu1 %vm50_vm1, %v36_v6  ;;  %v40_v20 = vld [vmem:[%s1439_s0 + $0x70] sm:$0xff]  ;;  %v33_v21 = vld [vmem:[%s1439_s0 + $0x38] sm:$0xff]  ;;  %v485_v23 = vld [vmem:[%s1441_s5] sm:$0xff] }
   0x8   :  { %1002 = vmatmul.mubr.msk.f32.gmra.mrb[2].mxu0 %vm50_vm1, %v29_v7  ;;  %1087 = vmatprep.subr.bf16.mxu1 %v1086_v12  ;;  %v41_v22 = vld [vmem:[%s1439_s0 + $0x78] sm:$0xff]  ;;  %v486_v24 = vld [vmem:[%s1441_s5 + $0x8] sm:$0xff]  ;;  %v487_v26 = vld [vmem:[%s1441_s5 + $0x10] sm:$0xff] }
   0x9   :  { %1004 = vmatprep.mubr.msk.f32.mxu0 %vm50_vm1, %v30_v8  ;;  %1089 = vmatpush3.bf16.msra.mxu1 %v1086_v12  ;;  %v1094_v25 = vpack.c.bf16 %v486_v24, %v485_v23  ;;  %v488_v27 = vld [vmem:[%s1441_s5 + $0x18] sm:$0xff]  ;;  %v887_v29 = vld [vmem:[%s1442_s2] ss:$0 sm:$0xff] }
   0xa   :  { %1014 = vmatmul.mubr.msk.f32.gmra.mrb[2].mxu1 %vm50_vm1, %v37_v11  ;;  %1091 = vmatprep.subr.bf16.mxu1 %v1090_v16  ;;  %v1098_v28 = vpack.c.bf16 %v488_v27, %v487_v26  ;;  %v905_v14 = vld [vmem:[%s1443_s4] ss:$0 sm:$0xff] }
   0xb   :  { %1016 = vmatprep.mubr.msk.f32.mxu1 %vm50_vm1, %v38_v15  ;;  %1095 = vmatprep.subr.bf16.mxu0 %v1094_v25 }
   0xc   :  { %1005 = vmatmul.mubr.msk.f32.gmra.mrb[4].mxu0 %vm50_vm1, %v31_v17 }
   0xd   :  { %1007 = vmatprep.mubr.msk.f32.mxu0 %vm50_vm1, %v32_v18  ;;  %1093 = vmatpush3.bf16.msra.mxu1 %v1090_v16 }
   0xe   :  { %1017 = vmatmul.mubr.msk.f32.gmra.mrb[4].mxu1 %vm50_vm1, %v39_v19  ;;  %1097 = vmatpush3.bf16.msra.mxu0 %v1094_v25 }
   0xf   :  { %1019 = vmatprep.mubr.msk.f32.mxu1 %vm50_vm1, %v40_v20  ;;  %1099 = vmatprep.subr.bf16.mxu0 %v1098_v28 }
  0x10   :  { %1008 = vmatmul.mubr.msk.f32.gmra.mrb[6].mxu0 %vm50_vm1, %v33_v21 }
  0x12   :  { %1020 = vmatmul.mubr.msk.f32.gmra.mrb[6].mxu1 %vm50_vm1, %v41_v22  ;;  %1101 = vmatpush3.bf16.msra.mxu0 %v1098_v28 }
  0xd7   :  { %v1000_v30 = vpop.f32.mrb[0].mxu0 }
  0xd8   :  { %v175_v31 = vadd.f32 %v1000_v30, %v887_v29  ;;  %v169_v32 = vpop.f32.mrb[1].mxu0 }
  0xd9   :  { %v170_v33 = vadd.f32 %v887_v29, %v169_v32  ;;  %v1012_v34 = vpop.f32.mrb[0].mxu1 }
  0xda   :  { %v209_v35 = vpop.f32.mrb[1].mxu1  ;;  %v249_v38 = vmax.f32 %v175_v31, 0.0  ;;  %v215_v61 = vadd.f32 %v1012_v34, %v887_v29 }
  0xdb   :  { %v248_v36 = vmax.f32 %v170_v33, 0.0  ;;  %v1003_v37 = vpop.f32.mrb[2].mxu0  ;;  %v210_v55 = vadd.f32 %v887_v29, %v209_v35 }
  0xdc   :  { %v185_v39 = vadd.f32 %v1003_v37, %v887_v29  ;;  %v179_v40 = vpop.f32.mrb[3].mxu0  ;;  %v257_v2 = vmax.f32 %v215_v61, 0.0 }
  0xdd   :  { %v180_v41 = vadd.f32 %v887_v29, %v179_v40  ;;  %1030 = vmatprep.mubr.msk.f32.mxu1 %vm275_vm2, %v248_v36  ;;  %v1015_v42 = vpop.f32.mrb[2].mxu1  ;;  %v256_v0 = vmax.f32 %v210_v55, 0.0 }
  0xde   :  { %1031 = vmatmul.mubr.msk.f32.vlgmr.msra.gmra.mrb[8].mxu1 %vm275_vm2, %v249_v38  ;;  %v219_v43 = vpop.f32.mrb[3].mxu1  ;;  %v251_v46 = vmax.f32 %v185_v39, 0.0  ;;  %v225_v3 = vadd.f32 %v1015_v42, %v887_v29 }
  0xdf   :  { %v250_v44 = vmax.f32 %v180_v41, 0.0  ;;  %v1006_v45 = vpop.f32.mrb[4].mxu0  ;;  %v220_v1 = vadd.f32 %v887_v29, %v219_v43 }
  0xe0   :  { %v195_v47 = vadd.f32 %v1006_v45, %v887_v29  ;;  %v189_v48 = vpop.f32.mrb[5].mxu0  ;;  %v259_v6 = vmax.f32 %v225_v3, 0.0 }
  0xe1   :  { %1033 = vmatprep.mubr.msk.f32.mxu1 %vm275_vm2, %v250_v44  ;;  %v190_v49 = vadd.f32 %v887_v29, %v189_v48  ;;  %v1018_v50 = vpop.f32.mrb[4].mxu1  ;;  %v258_v4 = vmax.f32 %v220_v1, 0.0 }
  0xe2   :  { %1034 = vmatmul.mubr.msk.f32.gmra.mrb[10].mxu1 %vm275_vm2, %v251_v46  ;;  %v253_v51 = vmax.f32 %v195_v47, 0.0  ;;  %v229_v52 = vpop.f32.mrb[5].mxu1  ;;  %v235_v7 = vadd.f32 %v1018_v50, %v887_v29 }
  0xe3   :  { %v252_v53 = vmax.f32 %v190_v49, 0.0  ;;  %v1009_v54 = vpop.f32.mrb[6].mxu0  ;;  %v230_v5 = vadd.f32 %v887_v29, %v229_v52 }
  0xe4   :  { %v205_v56 = vadd.f32 %v1009_v54, %v887_v29  ;;  %v199_v57 = vpop.f32.mrb[7].mxu0  ;;  %v261_v10 = vmax.f32 %v235_v7, 0.0 }
  0xe5   :  { %v200_v58 = vadd.f32 %v887_v29, %v199_v57  ;;  %1036 = vmatprep.mubr.msk.f32.mxu1 %vm275_vm2, %v252_v53  ;;  %v1021_v59 = vpop.f32.mrb[6].mxu1  ;;  %v260_v8 = vmax.f32 %v230_v5, 0.0 }
  0xe6   :  { %v255_v60 = vmax.f32 %v205_v56, 0.0  ;;  %1037 = vmatmul.mubr.msk.f32.gmra.mrb[12].mxu1 %vm275_vm2, %v253_v51  ;;  %v239_v62 = vpop.f32.mrb[7].mxu1  ;;  %v245_v11 = vadd.f32 %v1021_v59, %v887_v29 }
  0xe7   :  { %v254_v63 = vmax.f32 %v200_v58, 0.0  ;;  %v240_v9 = vadd.f32 %v887_v29, %v239_v62 }
  0xe8   :  { %v263_v13 = vmax.f32 %v245_v11, 0.0 }
  0xe9   :  { %1039 = vmatprep.mubr.msk.f32.mxu1 %vm275_vm2, %v254_v63  ;;  %v262_v12 = vmax.f32 %v240_v9, 0.0  ;;  %v1107_v63 = vmov 2  }
  0xea   :  { %1040 = vmatmul.mubr.msk.f32.gmra.mrb[14].mxu1 %vm275_vm2, %v255_v60  ;;  %1105 = vset.pattern.permute.xlu1 %v1107_v63 }
  0xeb   :  { %1042 = vmatprep.mubr.msk.f32.mxu1 %vm275_vm2, %v256_v0  ;;  %1106 = vset.pattern.permute.xlu0 %v1107_v63  ;;  %v1280_v0 = vld [vmem:[%s1444_s6] ss:$0 sm:$0xff] }
  0xee   :  { %1043 = vmatmul.mubr.msk.f32.gmra.mrb[16].mxu1 %vm275_vm2, %v257_v2 }
  0xef   :  { %1045 = vmatprep.mubr.msk.f32.mxu1 %vm275_vm2, %v258_v4 }
  0xf2   :  { %1046 = vmatmul.mubr.msk.f32.gmra.mrb[18].mxu1 %vm275_vm2, %v259_v6 }
  0xf3   :  { %1048 = vmatprep.mubr.msk.f32.mxu1 %vm275_vm2, %v260_v8 }
  0xf6   :  { %1049 = vmatmul.mubr.msk.f32.gmra.mrb[20].mxu1 %vm275_vm2, %v261_v10 }
  0xf7   :  { %1051 = vmatprep.mubr.msk.f32.mxu1 %vm275_vm2, %v262_v12 }
  0xfa   :  { %1052 = vmatmul.mubr.msk.f32.gmra.mrb[22].mxu1 %vm275_vm2, %v263_v13 }
 0x1b1   :  { %v1032_v15 = vpop.f32.mrb[8].mxu1 }
 0x1b2   :  { %v396_v16 = vadd.f32 %v1032_v15, %v905_v14  ;;  %v390_v17 = vpop.f32.mrb[9].mxu1 }
 0x1b3   :  { %v391_v18 = vadd.f32 %v905_v14, %v390_v17 }
 0x1b4   :  { %v470_v21 = vmax.f32 %v396_v16, 0.0 }
 0x1b5   :  { %v469_v19 = vmax.f32 %v391_v18, 0.0  ;;  %v1035_v20 = vpop.f32.mrb[10].mxu1 }
 0x1b6   :  { %v406_v22 = vadd.f32 %v1035_v20, %v905_v14  ;;  %v400_v23 = vpop.f32.mrb[11].mxu1 }
 0x1b7   :  { %v401_v24 = vadd.f32 %v905_v14, %v400_v23  ;;  %1062 = vmatprep.mubr.msk.f32.mxu0 %vm275_vm2, %v469_v19 }
 0x1b8   :  { %1063 = vmatmul.mubr.msk.f32.vlgmr.msra.gmra.mrb[8].mxu0 %vm275_vm2, %v470_v21  ;;  %v472_v27 = vmax.f32 %v406_v22, 0.0 }
 0x1b9   :  { %v471_v25 = vmax.f32 %v401_v24, 0.0  ;;  %v1038_v26 = vpop.f32.mrb[12].mxu1 }
 0x1ba   :  { %v416_v28 = vadd.f32 %v1038_v26, %v905_v14  ;;  %v410_v29 = vpop.f32.mrb[13].mxu1 }
 0x1bb   :  { %1065 = vmatprep.mubr.msk.f32.mxu0 %vm275_vm2, %v471_v25  ;;  %v411_v30 = vadd.f32 %v905_v14, %v410_v29 }
 0x1bc   :  { %1066 = vmatmul.mubr.msk.f32.gmra.mrb[10].mxu0 %vm275_vm2, %v472_v27  ;;  %v474_v31 = vmax.f32 %v416_v28, 0.0 }
 0x1bd   :  { %v473_v32 = vmax.f32 %v411_v30, 0.0  ;;  %v1041_v33 = vpop.f32.mrb[14].mxu1 }
 0x1be   :  { %v426_v34 = vadd.f32 %v1041_v33, %v905_v14  ;;  %v420_v35 = vpop.f32.mrb[15].mxu1 }
 0x1bf   :  { %v421_v36 = vadd.f32 %v905_v14, %v420_v35  ;;  %1068 = vmatprep.mubr.msk.f32.mxu0 %vm275_vm2, %v473_v32 }
 0x1c0   :  { %v476_v37 = vmax.f32 %v426_v34, 0.0  ;;  %1069 = vmatmul.mubr.msk.f32.gmra.mrb[12].mxu0 %vm275_vm2, %v474_v31 }
 0x1c1   :  { %v475_v38 = vmax.f32 %v421_v36, 0.0  ;;  %v1044_v39 = vpop.f32.mrb[16].mxu1 }
 0x1c2   :  { %v436_v40 = vadd.f32 %v1044_v39, %v905_v14  ;;  %v430_v41 = vpop.f32.mrb[17].mxu1 }
 0x1c3   :  { %1071 = vmatprep.mubr.msk.f32.mxu0 %vm275_vm2, %v475_v38  ;;  %v431_v42 = vadd.f32 %v905_v14, %v430_v41 }
 0x1c4   :  { %1072 = vmatmul.mubr.msk.f32.gmra.mrb[14].mxu0 %vm275_vm2, %v476_v37  ;;  %v478_v43 = vmax.f32 %v436_v40, 0.0 }
 0x1c5   :  { %v477_v44 = vmax.f32 %v431_v42, 0.0  ;;  %v1047_v45 = vpop.f32.mrb[18].mxu1 }
 0x1c6   :  { %v446_v46 = vadd.f32 %v1047_v45, %v905_v14  ;;  %v440_v47 = vpop.f32.mrb[19].mxu1 }
 0x1c7   :  { %1074 = vmatprep.mubr.msk.f32.mxu0 %vm275_vm2, %v477_v44  ;;  %v441_v48 = vadd.f32 %v905_v14, %v440_v47 }
 0x1c8   :  { %1075 = vmatmul.mubr.msk.f32.gmra.mrb[16].mxu0 %vm275_vm2, %v478_v43  ;;  %v480_v49 = vmax.f32 %v446_v46, 0.0 }
 0x1c9   :  { %v479_v50 = vmax.f32 %v441_v48, 0.0  ;;  %v1050_v51 = vpop.f32.mrb[20].mxu1 }
 0x1ca   :  { %v456_v52 = vadd.f32 %v1050_v51, %v905_v14  ;;  %v450_v53 = vpop.f32.mrb[21].mxu1 }
 0x1cb   :  { %1077 = vmatprep.mubr.msk.f32.mxu0 %vm275_vm2, %v479_v50  ;;  %v451_v54 = vadd.f32 %v905_v14, %v450_v53 }
 0x1cc   :  { %1078 = vmatmul.mubr.msk.f32.gmra.mrb[18].mxu0 %vm275_vm2, %v480_v49  ;;  %v482_v55 = vmax.f32 %v456_v52, 0.0 }
 0x1cd   :  { %v481_v56 = vmax.f32 %v451_v54, 0.0  ;;  %v1053_v57 = vpop.f32.mrb[22].mxu1 }
 0x1ce   :  { %v466_v58 = vadd.f32 %v1053_v57, %v905_v14  ;;  %v460_v59 = vpop.f32.mrb[23].mxu1 }
 0x1cf   :  { %1080 = vmatprep.mubr.msk.f32.mxu0 %vm275_vm2, %v481_v56  ;;  %v461_v60 = vadd.f32 %v905_v14, %v460_v59 }
 0x1d0   :  { %1081 = vmatmul.mubr.msk.f32.gmra.mrb[20].mxu0 %vm275_vm2, %v482_v55  ;;  %v484_v61 = vmax.f32 %v466_v58, 0.0 }
 0x1d1   :  { %v483_v62 = vmax.f32 %v461_v60, 0.0 }
 0x1d3   :  { %1083 = vmatprep.mubr.msk.f32.mxu0 %vm275_vm2, %v483_v62 }
 0x1d4   :  { %1084 = vmatmul.mubr.msk.f32.gmra.mrb[22].mxu0 %vm275_vm2, %v484_v61 }
 0x28b   :  { %v1064_v1 = vpop.f32.mrb[8].mxu0 }
 0x28c   :  { %v616_v2 = vadd.f32 %v1064_v1, %v1280_v0  ;;  %v610_v3 = vpop.f32.mrb[9].mxu0 }
 0x28d   :  { %v611_v15 = vadd.f32 %v1280_v0, %v610_v3 }
 0x28e   :  { %778 = vperm.xlu1 %1105, %v616_v2   ;;  %v693_v4 = vsel %vm689_vm3, %v616_v2, 0.0 }
 0x28f   :  { %694 = vadd.xlane.f32.xlu0 %v693_v4  ;;  %v1067_v5 = vpop.f32.mrb[10].mxu0  ;;  %v690_v19 = vsel %vm689_vm3, %v611_v15, 0.0 }
 0x290   :  { %v626_v6 = vadd.f32 %v1067_v5, %v1280_v0  ;;  %v620_v7 = vpop.f32.mrb[11].mxu0 }
 0x291   :  { %v1292_v20 = vadd.f32 %v1280_v0, %v620_v7 }
 0x292   :  { %788 = vperm.xlu1 %1105, %v626_v6   ;;  %v699_v17 = vsel %vm689_vm3, %v626_v6, 0.0 }
 0x293   :  { %v1070_v8 = vpop.f32.mrb[12].mxu0  ;;  %v696_v29 = vsel %vm689_vm3, %v1292_v20, 0.0 }
 0x294   :  { %v630_v9 = vpop.f32.mrb[13].mxu0  ;;  %v1309_v30 = vadd.f32 %v1070_v8, %v1280_v0 }
 0x295   :  { %v1288_v18 = vadd.f32 %v1280_v0, %v630_v9 }
 0x296   :  { %v705_v37 = vsel %vm689_vm3, %v1309_v30, 0.0 }
 0x297   :  { %v1073_v10 = vpop.f32.mrb[14].mxu0  ;;  %v702_v22 = vsel %vm689_vm3, %v1288_v18, 0.0 }
 0x298   :  { %v640_v11 = vpop.f32.mrb[15].mxu0  ;;  %v646_v41 = vadd.f32 %v1073_v10, %v1280_v0 }
 0x299   :  { %v1295_v21 = vadd.f32 %v1280_v0, %v640_v11 }
 0x29a   :  { %v711_v54 = vsel %vm689_vm3, %v646_v41, 0.0 }
 0x29b   :  { %v1076_v12 = vpop.f32.mrb[16].mxu0  ;;  %v708_v23 = vsel %vm689_vm3, %v1295_v21, 0.0 }
 0x29c   :  { %v650_v13 = vpop.f32.mrb[17].mxu0  ;;  %v1303_v28 = vadd.f32 %v1076_v12, %v1280_v0 }
 0x29d   :  { %v1312_v31 = vadd.f32 %v1280_v0, %v650_v13 }
 0x29f   :  { %v1079_v14 = vpop.f32.mrb[18].mxu0  ;;  %v714_v32 = vsel %vm689_vm3, %v1312_v31, 0.0 }
 0x2a0   :  { %v660_v16 = vpop.f32.mrb[19].mxu0  ;;  %v1318_v33 = vadd.f32 %v1079_v14, %v1280_v0 }
 0x2a1   :  { %v1328_v40 = vadd.f32 %v1280_v0, %v660_v16 }
 0x2a2   :  { %v723_v12 = vsel %vm689_vm3, %v1318_v33, 0.0 }
 0x2a3   :  { %v1082_v24 = vpop.f32.mrb[20].mxu0  ;;  %v720_v42 = vsel %vm689_vm3, %v1328_v40, 0.0 }
 0x2a4   :  { %v670_v25 = vpop.f32.mrb[21].mxu0  ;;  %v1335_v48 = vadd.f32 %v1082_v24, %v1280_v0 }
 0x2a5   :  { %773 = vperm.xlu0 %1106, %v611_v15   ;;  %v1348_v55 = vadd.f32 %v1280_v0, %v670_v25 }
 0x2a6   :  { %v729_v24 = vsel %vm689_vm3, %v1335_v48, 0.0 }
 0x2a7   :  { %v1085_v26 = vpop.f32.mrb[22].mxu0  ;;  %v726_v57 = vsel %vm689_vm3, %v1348_v55, 0.0 }
 0x2a8   :  { %v680_v27 = vpop.f32.mrb[23].mxu0  ;;  %v1364_v1 = vadd.f32 %v1085_v26, %v1280_v0 }
 0x2a9   :  { %v1351_v56 = vadd.f32 %v1280_v0, %v680_v27 }
 0x2ab   :  { %v732_v58 = vsel %vm689_vm3, %v1351_v56, 0.0 }
 0x2b6   :  { %700 = vadd.xlane.f32.xlu1 %v699_v17 }
 0x2c4   :  { %691 = vadd.xlane.f32.xlu0 %v690_v19 }
 0x2c7   :  { %783 = vperm.xlu1 %1105, %v1292_v20  }
 0x2c8   :  { %703 = vadd.xlane.f32.xlu0 %v702_v22 }
 0x2cc   :  { %709 = vadd.xlane.f32.xlu0 %v708_v23 }
 0x2e2   :  { %818 = vperm.xlu0 %1106, %v1303_v28  }
 0x2eb   :  { %697 = vadd.xlane.f32.xlu1 %v696_v29 }
 0x2fc   :  { %798 = vperm.xlu1 %1105, %v1309_v30  }
 0x301   :  { %715 = vadd.xlane.f32.xlu0 %v714_v32 }
 0x30d   :  { %v779_v38 = vpop.permute.xlu1 %778 }
 0x311   :  { %v789_v43 = vpop.permute.xlu1 %788 }
 0x317   :  { %828 = vperm.xlu0 %1106, %v1318_v33  }
 0x31c   :  { %v695_v34 = vpop.xlane.xlu0 %694 }
 0x31d   :  { %v740_v35 = vmul.f32 0.5, %v695_v34 }
 0x31f   :  { %v756_v36 = vsub.f32 %v616_v2, %v740_v35  ;;  %v717_v2 = vsel %vm689_vm3, %v1303_v28, 0.0 }
 0x320   :  { %706 = vadd.xlane.f32.xlu1 %v705_v37  ;;  %v735_v37 = vsel %vm689_vm3, %v1364_v1, 0.0 }
 0x321   :  { %v852_v39 = vadd.f32 %v779_v38, %v756_v36 }
 0x323   :  { %868 = vst.msk [vmem:[%s1445_s7 + $0x8] sm:$0xff] %vm689_vm3, %v852_v39 }
 0x324   :  { %v774_v49 = vpop.permute.xlu0 %773 }
 0x331   :  { %793 = vperm.xlu1 %1105, %v1288_v18  }
 0x335   :  { %808 = vperm.xlu1 %1105, %v646_v41  }
 0x336   :  { %721 = vadd.xlane.f32.xlu0 %v720_v42 }
 0x343   :  { %v701_v44 = vpop.xlane.xlu1 %700 }
 0x344   :  { %v742_v45 = vmul.f32 0.5, %v701_v44 }
 0x346   :  { %v758_v46 = vsub.f32 %v626_v6, %v742_v45 }
 0x347   :  { %v784_v59 = vpop.permute.xlu1 %783 }
 0x348   :  { %v854_v47 = vadd.f32 %v789_v43, %v758_v46 }
 0x34a   :  { %870 = vst.msk [vmem:[%s1445_s7 + $0x18] sm:$0xff] %vm689_vm3, %v854_v47 }
 0x34c   :  { %838 = vperm.xlu0 %1106, %v1335_v48  }
 0x351   :  { %v692_v50 = vpop.xlane.xlu0 %691 }
 0x352   :  { %v739_v51 = vmul.f32 0.5, %v692_v50 }
 0x354   :  { %v755_v52 = vsub.f32 %v611_v15, %v739_v51 }
 0x355   :  { %v704_v3 = vpop.xlane.xlu0 %703 }
 0x356   :  { %v851_v53 = vadd.f32 %v774_v49, %v755_v52  ;;  %v743_v5 = vmul.f32 0.5, %v704_v3 }
 0x358   :  { %867 = vst.msk [vmem:[%s1445_s7] sm:$0xff] %vm689_vm3, %v851_v53  ;;  %v759_v9 = vsub.f32 %v1288_v18, %v743_v5 }
 0x359   :  { %712 = vadd.xlane.f32.xlu1 %v711_v54  ;;  %v710_v13 = vpop.xlane.xlu0 %709 }
 0x35a   :  { %v745_v15 = vmul.f32 0.5, %v710_v13 }
 0x35c   :  { %v761_v19 = vsub.f32 %v1295_v21, %v745_v15 }
 0x36a   :  { %803 = vperm.xlu1 %1105, %v1295_v21   ;;  %v819_v21 = vpop.permute.xlu0 %818 }
 0x36b   :  { %727 = vadd.xlane.f32.xlu0 %v726_v57 }
 0x36f   :  { %733 = vadd.xlane.f32.xlu0 %v732_v58 }
 0x378   :  { %v698_v60 = vpop.xlane.xlu1 %697 }
 0x379   :  { %v741_v61 = vmul.f32 0.5, %v698_v60 }
 0x37b   :  { %v757_v62 = vsub.f32 %v1292_v20, %v741_v61 }
 0x37c   :  { %v799_v4 = vpop.permute.xlu1 %798 }
 0x37d   :  { %v853_v63 = vadd.f32 %v784_v59, %v757_v62 }
 0x37f   :  { %869 = vst.msk [vmem:[%s1445_s7 + $0x10] sm:$0xff] %vm689_vm3, %v853_v63 }
 0x385   :  { %848 = vperm.xlu0 %1106, %v1364_v1  }
 0x38e   :  { %718 = vadd.xlane.f32.xlu1 %v717_v2  ;;  %v716_v25 = vpop.xlane.xlu0 %715 }
 0x38f   :  { %v747_v26 = vmul.f32 0.5, %v716_v25 }
 0x391   :  { %v763_v32 = vsub.f32 %v1312_v31, %v747_v26 }
 0x39f   :  { %813 = vperm.xlu1 %1105, %v1312_v31  }
 0x3ad   :  { %v707_v6 = vpop.xlane.xlu1 %706 }
 0x3ae   :  { %v744_v7 = vmul.f32 0.5, %v707_v6 }
 0x3b0   :  { %v760_v8 = vsub.f32 %v1309_v30, %v744_v7 }
 0x3b1   :  { %v794_v10 = vpop.permute.xlu1 %793 }
 0x3b2   :  { %v856_v0 = vadd.f32 %v799_v4, %v760_v8  ;;  %v855_v11 = vadd.f32 %v794_v10, %v759_v9 }
 0x3b4   :  { %872 = vst.msk [vmem:[%s1445_s7 + $0x28] sm:$0xff] %vm689_vm3, %v856_v0  ;;  %871 = vst.msk [vmem:[%s1445_s7 + $0x20] sm:$0xff] %vm689_vm3, %v855_v11 }
 0x3b5   :  { %v809_v14 = vpop.permute.xlu1 %808 }
 0x3c3   :  { %724 = vadd.xlane.f32.xlu1 %v723_v12 }
 0x3d4   :  { %823 = vperm.xlu1 %1105, %v1328_v40  }
 0x3e6   :  { %v713_v16 = vpop.xlane.xlu1 %712 }
 0x3e7   :  { %v746_v17 = vmul.f32 0.5, %v713_v16 }
 0x3e9   :  { %v762_v18 = vsub.f32 %v646_v41, %v746_v17 }
 0x3ea   :  { %v804_v20 = vpop.permute.xlu1 %803 }
 0x3eb   :  { %v858_v22 = vadd.f32 %v809_v14, %v762_v18  ;;  %v857_v23 = vadd.f32 %v804_v20, %v761_v19 }
 0x3ed   :  { %874 = vst.msk [vmem:[%s1445_s7 + $0x38] sm:$0xff] %vm689_vm3, %v858_v22  ;;  %873 = vst.msk [vmem:[%s1445_s7 + $0x30] sm:$0xff] %vm689_vm3, %v857_v23 }
 0x3f8   :  { %730 = vadd.xlane.f32.xlu1 %v729_v24 }
 0x409   :  { %833 = vperm.xlu1 %1105, %v1348_v55  }
 0x41b   :  { %v719_v27 = vpop.xlane.xlu1 %718 }
 0x41c   :  { %v748_v29 = vmul.f32 0.5, %v719_v27 }
 0x41e   :  { %v764_v30 = vsub.f32 %v1303_v28, %v748_v29  ;;  %v829_v28 = vpop.permute.xlu0 %828 }
 0x41f   :  { %v814_v34 = vpop.permute.xlu1 %813 }
 0x420   :  { %v860_v35 = vadd.f32 %v819_v21, %v764_v30  ;;  %v859_v36 = vadd.f32 %v814_v34, %v763_v32 }
 0x422   :  { %876 = vst.msk [vmem:[%s1445_s7 + $0x48] sm:$0xff] %vm689_vm3, %v860_v35  ;;  %875 = vst.msk [vmem:[%s1445_s7 + $0x40] sm:$0xff] %vm689_vm3, %v859_v36  ;;  %v722_v31 = vpop.xlane.xlu0 %721 }
 0x423   :  { %v749_v38 = vmul.f32 0.5, %v722_v31 }
 0x425   :  { %v765_v43 = vsub.f32 %v1328_v40, %v749_v38 }
 0x426   :  { %v839_v47 = vpop.permute.xlu0 %838 }
 0x42a   :  { %v728_v49 = vpop.xlane.xlu0 %727 }
 0x42b   :  { %v751_v50 = vmul.f32 0.5, %v728_v49 }
 0x42d   :  { %736 = vadd.xlane.f32.xlu1 %v735_v37  ;;  %v767_v52 = vsub.f32 %v1348_v55, %v751_v50 }
 0x42e   :  { %v734_v58 = vpop.xlane.xlu0 %733 }
 0x42f   :  { %v753_v59 = vmul.f32 0.5, %v734_v58 }
 0x431   :  { %v769_v55 = vsub.f32 %v1351_v56, %v753_v59 }
 0x432   :  { %v849_v62 = vpop.permute.xlu0 %848 }
 0x43e   :  { %843 = vperm.xlu1 %1105, %v1351_v56  }
 0x450   :  { %v725_v39 = vpop.xlane.xlu1 %724 }
 0x451   :  { %v750_v41 = vmul.f32 0.5, %v725_v39 }
 0x453   :  { %v766_v42 = vsub.f32 %v1318_v33, %v750_v41 }
 0x454   :  { %v824_v44 = vpop.permute.xlu1 %823 }
 0x455   :  { %v862_v45 = vadd.f32 %v829_v28, %v766_v42  ;;  %v861_v46 = vadd.f32 %v824_v44, %v765_v43 }
 0x457   :  { %878 = vst.msk [vmem:[%s1445_s7 + $0x58] sm:$0xff] %vm689_vm3, %v862_v45  ;;  %877 = vst.msk [vmem:[%s1445_s7 + $0x50] sm:$0xff] %vm689_vm3, %v861_v46 }
 0x485   :  { %v731_v51 = vpop.xlane.xlu1 %730 }
 0x486   :  { %v752_v33 = vmul.f32 0.5, %v731_v51 }
 0x488   :  { %v768_v40 = vsub.f32 %v1335_v48, %v752_v33 }
 0x489   :  { %v834_v53 = vpop.permute.xlu1 %833 }
 0x48a   :  { %v864_v54 = vadd.f32 %v839_v47, %v768_v40  ;;  %v863_v57 = vadd.f32 %v834_v53, %v767_v52 }
 0x48c   :  { %880 = vst.msk [vmem:[%s1445_s7 + $0x68] sm:$0xff] %vm689_vm3, %v864_v54  ;;  %879 = vst.msk [vmem:[%s1445_s7 + $0x60] sm:$0xff] %vm689_vm3, %v863_v57 }
 0x4ba   :  { %v737_v60 = vpop.xlane.xlu1 %736 }
 0x4bb   :  { %v754_v61 = vmul.f32 0.5, %v737_v60 }
 0x4bd   :  { %v770_v48 = vsub.f32 %v1364_v1, %v754_v61 }
 0x4be   :  { %v844_v63 = vpop.permute.xlu1 %843 }
 0x4bf   :  { %v866_v2 = vadd.f32 %v849_v62, %v770_v48  ;;  %v865_v3 = vadd.f32 %v844_v63, %v769_v55 }
 0x4c1   :  { %882 = vst.msk [vmem:[%s1445_s7 + $0x78] sm:$0xff] %vm689_vm3, %v866_v2  ;;  %881 = vst.msk [vmem:[%s1445_s7 + $0x70] sm:$0xff] %vm689_vm3, %v865_v3 }

</bundles_post_ra>
